<compile_context>
chip_gen: v7x
topology: tpu7x:2x2x1
jax: 0.10.0
libtpu: 0.0.40
codegen_flags: <defaults>
</compile_context>

<pallas_src>
import jax
import jax.numpy as jnp
import numpy as np
from jax.experimental import pallas as pl
from jax.experimental.pallas import tpu as pltpu


# ----------------------------------------------------------------------------
# Parameter / buffer construction (plain JAX glue, deterministic)
# ----------------------------------------------------------------------------
def build_2d_sincos_posemb(h, w, embed_dim, temperature=10000.0):
    """MoCo-v3 style fixed 2D sin-cos positional embedding, shape (1, h*w, D)."""
    assert embed_dim % 4 == 0
    grid_w, grid_h = jnp.meshgrid(
        jnp.arange(w, dtype=jnp.float32),
        jnp.arange(h, dtype=jnp.float32),
        indexing="ij",
    )
    pos_dim = embed_dim // 4
    omega = jnp.arange(pos_dim, dtype=jnp.float32) / pos_dim
    omega = 1.0 / (temperature ** omega)
    out_w = jnp.einsum("m,d->md", grid_w.flatten(), omega)
    out_h = jnp.einsum("m,d->md", grid_h.flatten(), omega)
    pos_emb = jnp.concatenate(
        [jnp.sin(out_w), jnp.cos(out_w), jnp.sin(out_h), jnp.cos(out_h)], axis=1
    )[None, :, :]
    return pos_emb.astype(jnp.float32)


def init_params(key, num_channels, patch_size, dim_tokens, image_size, init_std=0.02):
    ph, pw = patch_size
    h_posemb = image_size[0] // ph
    w_posemb = image_size[1] // pw
    k_in = num_channels * ph * pw

    k_proj, k_mod = jax.random.split(key)
    # nn.Linear(k_in, dim_tokens, bias=False): weight shape (dim_tokens, k_in),
    # K ordered (ph, pw, C) with C fastest (matches the torch rearrange).
    bound = 1.0 / np.sqrt(k_in)
    proj_w = jax.random.uniform(
        k_proj, (dim_tokens, k_in), minval=-bound, maxval=bound, dtype=jnp.float32
    )
    mod_emb = init_std * jax.random.normal(k_mod, (1, 1, dim_tokens), dtype=jnp.float32)
    pos_emb = build_2d_sincos_posemb(h_posemb, w_posemb, dim_tokens)  # (1, N, D)
    return proj_w, pos_emb, mod_emb


def prepare_proj_weight(proj_w, num_channels, patch_size):
    """Hoisted out of the forward path (done once at param-load time).

    Permutes the Linear weight's K axis from torch's (ph, pw, C) order to the
    channel-major (C, ph, pw) order used by the kernel's patchify, transposes
    to (K, D) and casts to bf16.  The contraction is unchanged because the
    patch features use the identical K permutation.
    """
    D, K = proj_w.shape
    ph, pw = patch_size
    C = num_channels
    assert K == C * ph * pw
    w_cm = jnp.transpose(proj_w.reshape(D, ph, pw, C), (0, 3, 1, 2)).reshape(D, K)
    return jnp.asarray(w_cm.T, dtype=jnp.bfloat16)  # (K, D)


# ----------------------------------------------------------------------------
# Pallas kernel: patch-row tile (TM, K) @ resident weight (K, D)
# ----------------------------------------------------------------------------
def patch_proj_kernel(x_ref, w_ref, o_ref):
    # x_ref: (TM, K) bf16 patch rows; w_ref: (K, D or TN) bf16; o_ref: (TM, D or TN)
    o_ref[...] = jnp.dot(
        x_ref[...], w_ref[...], preferred_element_type=jnp.float32
    ).astype(o_ref.dtype)


def _pick_row_tile(m):
    for cand in (512, 256, 128):
        if m >= cand:
            return cand
    return m  # small M: full-extent block is always a legal block shape


def _pick_col_tile(d):
    for cand in (512, 256, 128):
        if d % cand == 0:
            return cand
    # TODO(synk): for odd D in the tiled-D fallback, pad D to a 256-multiple
    # for the kernel and slice after (avoids masked vst.msk partial stores).
    return d


def image_encoder_embedding(
    x, wt, pos_emb, mod_emb, patch_size, image_size, out_dtype=None
):
    """Forward pass of ImageEncoderEmbedding. Returns dict with 'x' and 'emb'.

    `wt` is the pre-laid-out (K, D) bf16 projection weight from
    prepare_proj_weight() (weight re-layout is NOT done per call).
    """
    B, C, H, W = x.shape
    ph, pw = patch_size
    assert H % ph == 0 and W % pw == 0
    nh, nw = H // ph, W // pw
    N = nh * nw
    K = C * ph * pw
    Kw, D = wt.shape
    assert Kw == K
    if out_dtype is None:
        out_dtype = x.dtype  # set to jnp.bfloat16 to halve the output write stream

    if (H, W) != tuple(image_size):
        # TODO(synk): interpolate_pos_encoding (bicubic resize of pos_emb) not implemented.
        raise NotImplementedError("pos-emb interpolation not implemented")

    # --- patchify in channel-major (C, ph, pw) feature order, in bf16 ---------
    # Single XLA fusion (cast + transpose); the weight's K axis was permuted
    # identically offline, so the contraction is unchanged.
    # TODO(synk): fusing patch extraction fully into the kernel (index_map on raw
    # NCHW + in-VMEM reorg) would remove this intermediate (M, K) buffer but is
    # blocked by small ph/pw block-shape constraints; left as a follow-up.
    patches = (
        x.astype(jnp.bfloat16)
        .reshape(B, C, nh, ph, nw, pw)
        .transpose(0, 2, 4, 1, 3, 5)          # (B, nh, nw, C, ph, pw)
        .reshape(B * N, K)
    )

    # --- tiling ---------------------------------------------------------------
    M = B * N
    TM = _pick_row_tile(M)
    num_row_tiles = pl.cdiv(M, TM)            # ragged last tile masked by Pallas
    out_itemsize = np.dtype(out_dtype).itemsize
    weight_bytes = K * D * 2
    resident_weight = weight_bytes <= (12 << 20)   # fits VMEM with headroom

    if resident_weight:
        # Weight DMA'd once (constant block index); only patches stream.
        grid = (num_row_tiles,)
        x_spec_kwargs = {}
        in_buf = 2
        if num_row_tiles >= 3:
            # Deeper prefetch on the only streamed operand (cheap vs VMEM budget).
            x_spec_kwargs["pipeline_mode"] = pl.Buffered(3)
            in_buf = 3
        in_specs = [
            pl.BlockSpec((TM, K), lambda i: (i, 0), **x_spec_kwargs),
            pl.BlockSpec((K, D), lambda i: (0, 0)),
        ]
        out_specs = pl.BlockSpec((TM, D), lambda i: (i, 0))
        dims = ("parallel",)                   # row tiles shard across v7x's 2 TCs
        budget = in_buf * TM * K * 2 + 2 * weight_bytes + 2 * TM * D * out_itemsize
        weight_fetches = 1
    else:
        # Fallback for very large K*D: tile D, keep j as the INNER grid axis so
        # the patch tile stays resident across the D sweep.
        TN = _pick_col_tile(D)
        grid = (num_row_tiles, D // TN)
        in_specs = [
            pl.BlockSpec((TM, K), lambda i, j: (i, 0)),
            pl.BlockSpec((K, TN), lambda i, j: (0, j)),
        ]
        out_specs = pl.BlockSpec((TM, TN), lambda i, j: (i, j))
        dims = ("parallel", "parallel")
        budget = 2 * TM * K * 2 + 2 * K * TN * 2 + 2 * TM * TN * out_itemsize
        weight_fetches = num_row_tiles

    # Explicit VMEM budget from the actual buffers + headroom; never request the
    # full 64 MiB physical VMEM of v7x.
    vmem_limit = int(min(max(budget + (2 << 20), 16 << 20), 48 << 20))

    cost = pl.CostEstimate(
        flops=2 * M * K * D,
        transcendentals=0,
        bytes_accessed=M * K * 2 + weight_fetches * weight_bytes + M * D * out_itemsize,
    )

    x_proj = pl.pallas_call(
        patch_proj_kernel,
        out_shape=jax.ShapeDtypeStruct((M, D), out_dtype),
        grid=grid,
        in_specs=in_specs,
        out_specs=out_specs,
        compiler_params=pltpu.CompilerParams(
            dimension_semantics=dims,
            vmem_limit_bytes=vmem_limit,
        ),
        cost_estimate=cost,
    )(patches, wt)

    x_out = x_proj.reshape(B, N, D)

    # 'emb' is batch-invariant: compute pos+mod once; broadcast to the module's
    # (B, N, D) output shape.
    # TODO(synk): skip the broadcast_to if downstream can consume a (1, N, D) emb.
    emb = jnp.broadcast_to((pos_emb + mod_emb).astype(out_dtype), (B, N, D))

    return {"tensor": x, "x": x_out, "emb": emb}


# ----------------------------------------------------------------------------
# Pure-JAX references for verification
# ----------------------------------------------------------------------------
def reference_forward_f32(x, proj_w, pos_emb, mod_emb, patch_size):
    """Exact PyTorch-semantics (f32) reference."""
    B, C, H, W = x.shape
    ph, pw = patch_size
    nh, nw = H // ph, W // pw
    patches = (
        x.reshape(B, C, nh, ph, nw, pw)
        .transpose(0, 2, 4, 3, 5, 1)            # (B, nh, nw, ph, pw, C)
        .reshape(B, nh * nw, C * ph * pw)
    )
    x_patch = patches @ proj_w.T
    x_emb = jnp.broadcast_to(pos_emb + mod_emb, (B,) + pos_emb.shape[1:])
    return x_patch, x_emb


def reference_forward_bf16(x, proj_w, patch_size):
    """Reference matching the kernel's bf16-operand / f32-accumulate math."""
    B, C, H, W = x.shape
    ph, pw = patch_size
    nh, nw = H // ph, W // pw
    D = proj_w.shape[0]
    K = C * ph * pw
    patches = (
        x.astype(jnp.bfloat16)
        .reshape(B, C, nh, ph, nw, pw)
        .transpose(0, 2, 4, 1, 3, 5)
        .reshape(B, nh * nw, K)
    )
    w_cm = jnp.transpose(proj_w.reshape(D, ph, pw, C), (0, 3, 1, 2)).reshape(D, K)
    wt = w_cm.T.astype(jnp.bfloat16)
    return jnp.dot(patches, wt, preferred_element_type=jnp.float32).astype(x.dtype)


if __name__ == "__main__":
    # Small, divisible shapes: B=2, C=4, image 16x16, patch 4 -> N=16, K=64, D=32
    B, C = 2, 4
    image_size = (16, 16)
    patch_size = (4, 4)
    dim_tokens = 32

    key = jax.random.PRNGKey(0)
    k_x, k_params = jax.random.split(key)
    x = jax.random.normal(k_x, (B, C, image_size[0], image_size[1]), dtype=jnp.float32)

    proj_w, pos_emb, mod_emb = init_params(
        k_params, C, patch_size, dim_tokens, image_size
    )
    # Weight re-layout hoisted out of the forward path (done once here).
    wt = prepare_proj_weight(proj_w, C, patch_size)

    out = image_encoder_embedding(x, wt, pos_emb, mod_emb, patch_size, image_size)
    jax.block_until_ready(out["x"])
    jax.block_until_ready(out["emb"])

    # Tight check vs. a reference using identical bf16-operand math.
    ref_x_bf16 = reference_forward_bf16(x, proj_w, patch_size)
    np.testing.assert_allclose(
        np.asarray(out["x"]), np.asarray(ref_x_bf16), atol=1e-4, rtol=1e-4
    )

    # Loose check vs. the exact f32 PyTorch semantics (bf16 operand cast only diff).
    ref_x_f32, ref_emb = reference_forward_f32(x, proj_w, pos_emb, mod_emb, patch_size)
    np.testing.assert_allclose(
        np.asarray(out["x"]), np.asarray(ref_x_f32), atol=5e-2, rtol=5e-2
    )
    np.testing.assert_allclose(
        np.asarray(out["emb"]), np.asarray(ref_emb), atol=1e-6, rtol=1e-6
    )

    assert out["x"].shape == (B, 16, dim_tokens)
    assert out["emb"].shape == (B, 16, dim_tokens)
    print("KERNEL_OK")
</pallas_src>

<mosaic_0001>
module attributes {stable_mosaic.version = 11 : i64} {
  func.func @patch_proj_kernel(%arg0: i32, %arg1: memref<32x64xbf16, #tpu.memory_space<vmem>>, %arg2: memref<64x32xbf16, #tpu.memory_space<vmem>>, %arg3: memref<32x32xf32, #tpu.memory_space<vmem>>) attributes {dimension_semantics = [#tpu.dimension_semantics<parallel>], iteration_bounds = array<i64: 1>, scalar_prefetch = 0 : i64, scratch_operands = 0 : i64, tpu.core_type = #tpu.core_type<tc>, window_params = [{transform_indices = @transform_0, window_bounds = array<i64: 32, 64>}, {pipeline_mode = #tpu.pipeline_mode<synchronous>, transform_indices = @transform_1, window_bounds = array<i64: 64, 32>}, {transform_indices = @transform_2, window_bounds = array<i64: 32, 32>}]} {
    %c0 = arith.constant 0 : index
    %c0_0 = arith.constant 0 : index
    %0 = vector.load %arg1[%c0, %c0_0] : memref<32x64xbf16, #tpu.memory_space<vmem>>, vector<32x64xbf16>
    %c0_1 = arith.constant 0 : index
    %c0_2 = arith.constant 0 : index
    %1 = vector.load %arg2[%c0_1, %c0_2] : memref<64x32xbf16, #tpu.memory_space<vmem>>, vector<64x32xbf16>
    %cst = arith.constant dense<0.000000e+00> : vector<32x32xf32>
    %2 = tpu.matmul %0, %1, %cst {dimension_numbers = #tpu.dot_dimension_numbers<[1], [0], [0], [1], [0, 0, 1, 1], [], []>} : vector<32x64xbf16>, vector<64x32xbf16>, vector<32x32xf32> -> vector<32x32xf32>
    %c0_3 = arith.constant 0 : index
    %c0_4 = arith.constant 0 : index
    %3 = vector.load %arg3[%c0_3, %c0_4] : memref<32x32xf32, #tpu.memory_space<vmem>>, vector<32x32xf32>
    tpu.vector_store %arg3[%c0_3, %c0_4], %2 {strides = array<i32>} : memref<32x32xf32, #tpu.memory_space<vmem>>, vector<32x32xf32>,
    return
  }
  func.func @transform_0(%arg0: i32) -> (i32, i32) {
    %c0_i32 = arith.constant 0 : i32
    %c0_i32_0 = arith.constant 0 : i32
    return %arg0, %c0_i32 : i32, i32
  }
  func.func @transform_1(%arg0: i32) -> (i32, i32) {
    %c0_i32 = arith.constant 0 : i32
    %c0_i32_0 = arith.constant 0 : i32
    %c0_i32_1 = arith.constant 0 : i32
    return %c0_i32, %c0_i32_0 : i32, i32
  }
  func.func @transform_2(%arg0: i32) -> (i32, i32) {
    %c0_i32 = arith.constant 0 : i32
    %c0_i32_0 = arith.constant 0 : i32
    return %arg0, %c0_i32 : i32, i32
  }
}

</mosaic_0001>

<bundles_post_ra>
// kernel: tpu_custom_call.1
= control target key start
LH: loop header
LB: loop body
LE: loop exit
PB: predicated region body
PF: predicated region fallthrough
CT: control target
= control target key end

     0   :  { %vm59_vm0 = vcmask 523264   ;;  %s243_s0 = inlined_call_operand.vmem [shape: bf16[32,64], index: 0, kind: input, shape index: {}]   ;;  %s244_s1 = inlined_call_operand.vmem [shape: bf16[64,32], index: 1, kind: input, shape index: {}]   ;;  %s245_s2 = inlined_call_operand.hbm [shape: f32[32,32], index: 2, kind: output, shape index: {}]  }
   0x1   :  { %v165_v0 = vld [vmem:[%s244_s1] sm:$0xff]   ;;  %v166_v1 = vld [vmem:[%s244_s1 + $0x8] sm:$0xff]   ;;  %v167_v2 = vld [vmem:[%s244_s1 + $0x10] sm:$0xff]  }
   0x2   :  { %150 = vmatprep.subr.bf16.mxu0 %v165_v0  ;;  %v169_v3 = vld [vmem:[%s243_s0] sm:$0xff]  }
   0x3   :  { %151 = vmatpush3.bf16.msra.mxu0 %v165_v0  ;;  %158 = vmatprep.mubr.msk.bf16.mxu0 %vm59_vm0, %v169_v3 }
   0x4   :  { %152 = vmatprep.subr.bf16.mxu0 %v166_v1 }
   0x5   :  { %7 = vsyncpa [#allocation3], 0  ;;  %v168_v4 = vld [vmem:[%s244_s1 + $0x18] sm:$0xff]   ;;  %v170_v5 = vld [vmem:[%s243_s0 + $0x8] sm:$0xff]   ;;  %vm115_vm1 = vcmask 261120   ;;  %s195_s21 = smov [#allocation2]  }
   0x6   :  { %s125_s22 = sshll.u32 %s195_s21, 4  ;;  %s126_s22 = int_to_ptr.vmem [resolvable:$true] %s125_s22 }
   0x7   :  { %153 = vmatpush3.bf16.msra.mxu0 %v166_v1  ;;  %s171_s1 = scalar_lea.vmem %s126_s22, 512  ;;  %p176_p1 = scmp.lt.s32.totalorder %s126_s22, %s126_s22 }
   0x8   :  { %154 = vmatprep.subr.bf16.mxu0 %v167_v2  ;;  %p172_p0 = scmp.ne.s32.totalorder %s126_s22, %s171_s1  ;;  %p177_p2 = scmp.lt.s32.totalorder %s171_s1, %s171_s1 }
   0xa   :  { %p178_p3 = por %p177_p2, %p176_p1 }
   0xb   :  { %155 = vmatpush3.bf16.msra.mxu0 %v167_v2 }
   0xc   :  { %156 = vmatprep.subr.bf16.mxu0 %v168_v4  ;;  %p179_p4 = pnand %p178_p3, %p172_p0 }
   0xf   :  { %157 = vmatpush3.bf16.msra.mxu0 %v168_v4 }
  0x12   :  { %159 = vmatmul.mubr.msk.bf16.vlgmr.msra.gmra.mrb[0].mxu0 %vm59_vm0, %v170_v5 }
  0xe5   :  { %v160_v6 = vpop.f32.mrb[0].mxu0 }
  0xe6   :  { %118 = vst.msk [vmem:[#allocation2 + $0x10] sm:$0xff] %vm115_vm1, %v160_v6  ;;  %v100_v7 = vpop.f32.mrb[1].mxu0 }
  0xe7   :  { %116 = vst.msk [vmem:[#allocation2] sm:$0xff] %vm115_vm1, %v100_v7  ;;  %v161_v8 = vpop.f32.mrb[2].mxu0 }
  0xe8   :  { %119 = vst.msk [vmem:[#allocation2 + $0x18] sm:$0xff] %vm115_vm1, %v161_v8  ;;  %v103_v9 = vpop.f32.mrb[3].mxu0 }
  0xe9   :  { %117 = vst.msk [vmem:[#allocation2 + $0x8] sm:$0xff] %vm115_vm1, %v103_v9 }
  0xea   :  { %182 = shalt.err (!%p179_p4)
}
  0xeb   :  { %s183_s24 = scalar_lea.hbm %s245_s2, 512 }
  0xec   :  { %p184_p5 = scmp.ne.s32.totalorder %s245_s2, %s183_s24  ;;  %p187_p6 = scmp.lt.u32.totalorder %s183_s24, %s245_s2 }
  0xee   :  { %p189_p7 = pnand %p187_p6, %p184_p5 }
  0xf0   :  { %192 = shalt.err (!%p189_p7)
}
  0xf1   :  { %s196_s29 = smov 128   ;;  %s197_s30 = smov 8  }
  0xf2   :  { %131 = dma.vmem_to_hbm [thread:$0]  %s126_s22, 512, %s245_s2, [#allocation3], %s196_s29, %s196_s29, %s197_s30  }
  0xf3   :  { %193 = dma.done.wait [#allocation3], 512  }
  0xf4   :  { %194 = vsyncadd [#allocation3], 4294966784 }
  0xf5   :  { %135 = vsyncpa [#allocation3], 1 }

</bundles_post_ra>
